<compile_context>
chip_gen: v7x
topology: tpu7x:2x2x1
jax: 0.10.0
libtpu: 0.0.40
codegen_flags: <defaults>
</compile_context>

<pallas_src>
import jax
import jax.numpy as jnp
import numpy as np
from jax import lax
from jax.experimental import pallas as pl
from jax.experimental.pallas import tpu as pltpu


def _pos_embed_kernel(x_ref, wt_ref, posb_ref, cls_ref, o_ref):
    # x_ref:    (bb, L, Cin)    bb batch elements
    # wt_ref:   (Cin, tn)       pre-transposed weight slice (K x N)
    # posb_ref: (1, L, tn)      pos_encoding + bias slice
    # cls_ref:  (1, 1, tn)      cls token slice
    # o_ref:    (bb, L+1, tn)   [cls ; x@W^T + b + pos]
    bb, l, cin = x_ref.shape
    tn = wt_ref.shape[1]

    x2d = x_ref[...].reshape(bb * l, cin)                    # (bb*L, Cin)
    proj = lax.dot_general(                                   # (bb*L, tn), f32 acc
        x2d, wt_ref[...],
        dimension_numbers=(((1,), (0,)), ((), ())),
        preferred_element_type=jnp.float32)

    y = proj.reshape(bb, l, tn) + posb_ref[...]               # f32

    o_ref[:, 0:1, :] = jnp.broadcast_to(
        cls_ref[...], (bb, 1, tn)).astype(o_ref.dtype)
    o_ref[:, 1:, :] = y.astype(o_ref.dtype)


def positional_embedding(x, w, b, pos_encoding, cls_token, *, compute_dtype=None):
    """x: (B, L, Cin); w: (Cout, Cin) torch-style; returns (B, L+1, Cout).

    compute_dtype: optional I/O dtype (e.g. jnp.bfloat16) to halve HBM traffic;
    accumulation stays f32.
    """
    B, L, Cin = x.shape
    Cout = w.shape[0]

    # --- one-time wrapper prep (amortized over all grid steps) -------------
    wt = jnp.transpose(w, (1, 0))                       # (Cin, Cout)
    posb = pos_encoding + b.reshape(1, 1, Cout)         # fuse bias into pos (f32)
    cls = cls_token

    if compute_dtype is not None:
        x = x.astype(compute_dtype)
        wt = wt.astype(compute_dtype)
        posb = posb.astype(compute_dtype)
        cls = cls.astype(compute_dtype)
        out_dtype = compute_dtype
    else:
        out_dtype = x.dtype

    itemsize = jnp.dtype(x.dtype).itemsize

    # --- tile sizing --------------------------------------------------------
    # Conservative double-buffered VMEM budget: safe on v7x (64 MiB physical),
    # plenty of headroom on v5e/v6e (128 MiB).
    vmem_budget = 40 * 1024 * 1024

    def footprint(bb_, tn_):
        per_batch = 2 * (bb_ * L * Cin + bb_ * (L + 1) * tn_) * itemsize
        params = 2 * (Cin * tn_ + L * tn_ + tn_) * itemsize
        return per_batch + params

    # Keep the full Cout resident (constant index_map -> weight/pos/cls DMA'd
    # once); only tile Cout as a fallback for very large models.
    tn = Cout
    if footprint(1, Cout) > vmem_budget and Cout % 256 == 0:
        tn = 256

    # Batch-block size: ~1024 M rows per step, divisor of B, within VMEM budget.
    target_rows = 1024
    divisors = [d for d in range(1, B + 1) if B % d == 0]
    bb = 1
    for d in divisors:
        if footprint(d, tn) > vmem_budget:
            break
        bb = d
        if d * L >= target_rows:
            break

    # Keep >=2 blocks along the parallel batch axis so v7x's second TensorCore
    # has work (harmless on single-TC v5e/v6e).
    if B // bb < 2:
        smaller = [d for d in divisors if d < bb]
        if smaller:
            bb = smaller[-1]

    grid = (B // bb, Cout // tn)

    vmem_limit = int(min(48 * 1024 * 1024,
                         max(32 * 1024 * 1024, footprint(bb, tn) * 5 // 4)))

    out = pl.pallas_call(
        _pos_embed_kernel,
        out_shape=jax.ShapeDtypeStruct((B, L + 1, Cout), out_dtype),
        grid_spec=pltpu.PrefetchScalarGridSpec(
            num_scalar_prefetch=0,
            grid=grid,
            in_specs=[
                pl.BlockSpec((bb, L, Cin), lambda i, j: (i, 0, 0)),
                pl.BlockSpec((Cin, tn), lambda i, j: (0, j)),
                pl.BlockSpec((1, L, tn), lambda i, j: (0, 0, j)),
                pl.BlockSpec((1, 1, tn), lambda i, j: (0, 0, j)),
            ],
            out_specs=pl.BlockSpec((bb, L + 1, tn), lambda i, j: (i, 0, j)),
        ),
        compiler_params=pltpu.CompilerParams(
            dimension_semantics=("parallel", "parallel"),
            vmem_limit_bytes=vmem_limit),
    )(x, wt, posb, cls)

    return out


def positional_embedding_ref(x, w, b, pos_encoding, cls_token):
    B = x.shape[0]
    y = jnp.einsum("blc,oc->blo", x, w) + b + pos_encoding
    cls = jnp.broadcast_to(cls_token, (B, 1, w.shape[0]))
    return jnp.concatenate([cls, y], axis=1)


if __name__ == "__main__":
    # Small, module-consistent shapes.
    B, L, Cin, Cout = 2, 8, 4, 32

    key = jax.random.PRNGKey(0)
    kx, kw, kb, kpos, kcls = jax.random.split(key, 5)

    x = jax.random.normal(kx, (B, L, Cin), dtype=jnp.float32)

    # Deterministic synthetic parameters (shapes per module __init__).
    w = jax.random.normal(kw, (Cout, Cin), dtype=jnp.float32) * 0.1   # nn.Linear weight
    b = jax.random.normal(kb, (Cout,), dtype=jnp.float32) * 0.1       # nn.Linear bias
    pos_encoding = jax.random.normal(kpos, (1, L, Cout), dtype=jnp.float32)
    cls_token = jax.random.normal(kcls, (1, 1, Cout), dtype=jnp.float32)

    ref = positional_embedding_ref(x, w, b, pos_encoding, cls_token)

    # f32 path (bit-faithful to the PyTorch module).
    out = positional_embedding(x, w, b, pos_encoding, cls_token)
    out = jax.block_until_ready(out)
    np.testing.assert_allclose(np.asarray(out), np.asarray(ref),
                               rtol=1e-5, atol=1e-5)

    # bf16 I/O path (halves HBM traffic at real shapes; f32 accumulation).
    out_bf16 = positional_embedding(x, w, b, pos_encoding, cls_token,
                                    compute_dtype=jnp.bfloat16)
    out_bf16 = jax.block_until_ready(out_bf16)
    np.testing.assert_allclose(np.asarray(out_bf16.astype(jnp.float32)),
                               np.asarray(ref), rtol=1e-1, atol=1e-1)

    print("KERNEL_OK")
</pallas_src>

<mosaic_0001>
module attributes {stable_mosaic.version = 11 : i64} {
  func.func @_pos_embed_kernel(%arg0: i32, %arg1: i32, %arg2: memref<1x8x4xf32, #tpu.memory_space<vmem>>, %arg3: memref<4x32xf32, #tpu.memory_space<vmem>>, %arg4: memref<1x8x32xf32, #tpu.memory_space<vmem>>, %arg5: memref<1x1x32xf32, #tpu.memory_space<vmem>>, %arg6: memref<1x9x32xf32, #tpu.memory_space<vmem>>) attributes {dimension_semantics = [#tpu.dimension_semantics<parallel>, #tpu.dimension_semantics<parallel>], iteration_bounds = array<i64: 2, 1>, scalar_prefetch = 0 : i64, scratch_operands = 0 : i64, tpu.core_type = #tpu.core_type<tc>, window_params = [{transform_indices = @transform_0, window_bounds = array<i64: 1, 8, 4>}, {transform_indices = @transform_1, window_bounds = array<i64: 4, 32>}, {transform_indices = @transform_2, window_bounds = array<i64: 1, 8, 32>}, {transform_indices = @transform_3, window_bounds = array<i64: 1, 1, 32>}, {transform_indices = @transform_4, window_bounds = array<i64: 1, 9, 32>}]} {
    %c0 = arith.constant 0 : index
    %c0_0 = arith.constant 0 : index
    %c0_1 = arith.constant 0 : index
    %0 = vector.load %arg2[%c0, %c0_0, %c0_1] : memref<1x8x4xf32, #tpu.memory_space<vmem>>, vector<1x8x4xf32>
    %1 = vector.shape_cast %0 : vector<1x8x4xf32> to vector<8x4xf32>
    %c0_2 = arith.constant 0 : index
    %c0_3 = arith.constant 0 : index
    %2 = vector.load %arg3[%c0_2, %c0_3] : memref<4x32xf32, #tpu.memory_space<vmem>>, vector<4x32xf32>
    %cst = arith.constant dense<0.000000e+00> : vector<8x32xf32>
    %3 = tpu.matmul %1, %2, %cst {dimension_numbers = #tpu.dot_dimension_numbers<[1], [0], [0], [1], [0, 0, 1, 1], [], []>} : vector<8x4xf32>, vector<4x32xf32>, vector<8x32xf32> -> vector<8x32xf32>
    %4 = vector.shape_cast %3 : vector<8x32xf32> to vector<1x8x32xf32>
    %c0_4 = arith.constant 0 : index
    %c0_5 = arith.constant 0 : index
    %c0_6 = arith.constant 0 : index
    %5 = vector.load %arg4[%c0_4, %c0_5, %c0_6] : memref<1x8x32xf32, #tpu.memory_space<vmem>>, vector<1x8x32xf32>
    %6 = arith.addf %4, %5 : vector<1x8x32xf32>
    %c0_7 = arith.constant 0 : index
    %c0_8 = arith.constant 0 : index
    %c0_9 = arith.constant 0 : index
    %7 = vector.load %arg5[%c0_7, %c0_8, %c0_9] : memref<1x1x32xf32, #tpu.memory_space<vmem>>, vector<1x1x32xf32>
    %c0_10 = arith.constant 0 : index
    %c0_11 = arith.constant 0 : index
    %c0_12 = arith.constant 0 : index
    %8 = vector.load %arg6[%c0_10, %c0_11, %c0_12] : memref<1x9x32xf32, #tpu.memory_space<vmem>>, vector<1x1x32xf32>
    tpu.vector_store %arg6[%c0_10, %c0_11, %c0_12], %7 {strides = array<i32>} : memref<1x9x32xf32, #tpu.memory_space<vmem>>, vector<1x1x32xf32>,
    %c0_13 = arith.constant 0 : index
    %c1 = arith.constant 1 : index
    %c0_14 = arith.constant 0 : index
    %9 = vector.load %arg6[%c0_13, %c1, %c0_14] : memref<1x9x32xf32, #tpu.memory_space<vmem>>, vector<1x8x32xf32>
    tpu.vector_store %arg6[%c0_13, %c1, %c0_14], %6 {strides = array<i32>} : memref<1x9x32xf32, #tpu.memory_space<vmem>>, vector<1x8x32xf32>,
    return
  }
  func.func @transform_0(%arg0: i32, %arg1: i32) -> (i32, i32, i32) {
    %c0_i32 = arith.constant 0 : i32
    %c0_i32_0 = arith.constant 0 : i32
    %c0_i32_1 = arith.constant 0 : i32
    return %arg0, %c0_i32, %c0_i32_0 : i32, i32, i32
  }
  func.func @transform_1(%arg0: i32, %arg1: i32) -> (i32, i32) {
    %c0_i32 = arith.constant 0 : i32
    %c0_i32_0 = arith.constant 0 : i32
    return %c0_i32, %arg1 : i32, i32
  }
  func.func @transform_2(%arg0: i32, %arg1: i32) -> (i32, i32, i32) {
    %c0_i32 = arith.constant 0 : i32
    %c0_i32_0 = arith.constant 0 : i32
    %c0_i32_1 = arith.constant 0 : i32
    return %c0_i32, %c0_i32_0, %arg1 : i32, i32, i32
  }
  func.func @transform_3(%arg0: i32, %arg1: i32) -> (i32, i32, i32) {
    %c0_i32 = arith.constant 0 : i32
    %c0_i32_0 = arith.constant 0 : i32
    %c0_i32_1 = arith.constant 0 : i32
    return %c0_i32, %c0_i32_0, %arg1 : i32, i32, i32
  }
  func.func @transform_4(%arg0: i32, %arg1: i32) -> (i32, i32, i32) {
    %c0_i32 = arith.constant 0 : i32
    %c0_i32_0 = arith.constant 0 : i32
    return %arg0, %c0_i32, %arg1 : i32, i32, i32
  }
}

</mosaic_0001>

<bundles_post_ra>
// kernel: tpu_custom_call.1
= control target key start
LH: loop header
LB: loop body
LE: loop exit
PB: predicated region body
PF: predicated region fallthrough
CT: control target
= control target key end

     0   :  { %s570_s15 = smov 0   ;;  %s572_s16 = smov 0   ;;  %s612_s0 = inlined_call_operand.vmem [shape: f32[2,8,4], index: 0, kind: input, shape index: {}]   ;;  %s613_s1 = inlined_call_operand.vmem [shape: f32[4,32], index: 1, kind: input, shape index: {}]   ;;  %s614_s2 = inlined_call_operand.vmem [shape: f32[1,8,32], index: 2, kind: input, shape index: {}]   ;;  %s615_s3 = inlined_call_operand.vmem [shape: f32[1,1,32], index: 3, kind: input, shape index: {}]   ;;  %s616_s4 = inlined_call_operand.vmem [shape: f32[2,9,32], index: 4, kind: output, shape index: {}]  }
   0x1   :  { %s574_s17 = smov 0  }
   0x2 LB: > { %s26_s18 = sadd.s32 1, %s537_s16  ;;  %p477_p0 = scmp.ge.s32.totalorder %s541_s17, 1  ;;  %s541_s17 = sphi %s574_s17, %s14_s17   ;;  %s537_s16 = sphi %s572_s16, %s618_s16   ;;  %s533_s15 = sphi %s570_s15, %s617_s15  }
   0x3   : > { %p28_p1 = scmp.ge.s32.totalorder %s26_s18, 2  ;;  %p201_p2 = scmp.lt.s32.totalorder %s541_s17, 3 }
   0x5   : > { %s620_s18 = smov (%p28_p1, %s26_s18), 0  ;;  %p202_p3 = pnand %p477_p0, %p201_p2 }
   0x6   : > { %v264_v0 = vld [vmem:[%s613_s1] sm:$0xf] (!%p202_p3)  ;;  %vm269_vm0 = vcmask (!%p202_p3), 1043456   ;;  %p240_p4 = scmp.lt.s32.totalorder (!%p202_p3), %s533_s15, 1  ;;  %v543_v1 = vmov (!%p202_p3), 0.0   ;;  %vm544_vm1 = vmmov (!%p202_p3), 0  }
   0x7   : > { %205 = sbr.rel (%p202_p3) target bundleno = 233 (0xe9), region = 36  ;;  %488 = vmatprep.subr.mxu0 (!%p202_p3), %v543_v1  ;;  %490 = vmatprep.mubr.msk.f32.mxu0 (!%p202_p3), %vm544_vm1, %v543_v1  ;;  %vm265_vm2 = vcmask (!%p202_p3), 31744   ;;  %v345_v3 = vld [vmem:[%s615_s3] sm:$0x1] (!%p202_p3)  ;;  %vm346_vm3 = vcmask (!%p202_p3), 253952   ;;  %vm348_vm4 = vcmask (!%p202_p3), 261120  }
   0x8   : > { %489 = vmatpush3.msk.msra.mxu0 (!%p202_p3), %vm269_vm0, %v264_v0  ;;  %v343_v4 = vld [vmem:[%s614_s2] sm:$0xff] (!%p202_p3) }
   0xe   : > { %s622_s15 = smov (!%p240_p4, %s533_s15), 1 }
   0xf   : > { %s478_s21 = sshll.u32 %s622_s15, 3  ;;  %s485_s25 = sshll.u32 %s622_s15, 4 }
  0x10   : > { %s243_s24 = scalar_lea.vmem %s612_s0, %s478_s21  ;;  %s262_s28 = scalar_lea.vmem %s616_s4, %s485_s25 }
  0x11   : > { %v263_v2 = vld [vmem:[%s243_s24] sm:$0xff]  ;;  %347 = vst.msk [vmem:[%s262_s28] sm:$0x1] %vm346_vm3, %v345_v3 }
  0x12   : > { %491 = vmatmul.mubr.msk.f32.vlgmr.msra.gmra.mrb[0].mxu0 %vm265_vm2, %v263_v2 }
  0xe5   : > { %v339_v5 = vpop.f32.mrb[0].mxu0 }
  0xe6   : > { %v344_v6 = vadd.f32 %v343_v4, %v339_v5  ;;  %v492_v7 = vpop.f32.mrb[1].mxu0 }
  0xe8   : > { %349 = vst.msk [vmem:[%s262_s28 + $0x1] sm:$0xff] %vm348_vm4, %v344_v6 }
  0xe9 PF: > { %s14_s17 = sadd.s32 1, %s541_s17   ;;  %s617_s15 = smov %s537_s16 }
  0xea   : > { %p11_p5 = scmp.ge.s32.totalorder %s14_s17, 4   ;;  %s618_s16 = smov %s620_s18 }
  0xec   :  { %13 = sbr.rel (!%p11_p5) target bundleno = 2 (0x2), region = 75 }

</bundles_post_ra>
